<compile_context>
chip_gen: v6e
topology: v6e:2x2x1
jax: 0.10.0
libtpu: 0.0.40
codegen_flags: <defaults>
</compile_context>

<pallas_src>
import functools

import jax
import jax.numpy as jnp
from jax import lax
from jax.experimental import pallas as pl
from jax.experimental.pallas import tpu as pltpu


# ----------------------------------------------------------------------------
# Pallas kernel: one batch element per grid step.  Channel-major, spatial in
# lanes, flattened over the padded width Wq so every 3x3 tap is a lane slice.
# ----------------------------------------------------------------------------
def resblock_kernel(x_ref, mask_ref, w1t_ref, b1_ref, w2t_ref, b2_ref,
                    out_ref, h1_ref, *, H, W, Cm, Wq, pooling):
    S1 = (H + 2) * Wq            # extended grid (1-px halo for conv2), flat
    S2 = H * Wq                  # output grid, flat (W meaningful cols / row)

    # ---- stage 1: conv1+bn1 and downsample-conv+bn fused into ONE matmul ----
    # slab row (dy*3+dx)*Cin + ci  ==  input shifted by (dy, dx); in the flat
    # padded-width layout that is a contiguous lane slice at a static offset.
    slab1 = jnp.concatenate(
        [x_ref[0, :, dy * Wq + dx: dy * Wq + dx + S1]
         for dy in range(3) for dx in range(3)], axis=0)          # (9*Cin, S1) bf16
    acc1 = jnp.dot(w1t_ref[...], slab1,
                   preferred_element_type=jnp.float32) + b1_ref[...]   # (2*Cm, S1)

    h1 = acc1[:Cm, :]            # conv1 + bn1 on the extended grid
    res = acc1[Cm:, :]           # downsample conv + bn (interior used below)

    # ELU(alpha=1), then zero the halo / junk lanes (= conv2's zero padding).
    h1 = jnp.where(h1 > 0.0, h1, jnp.exp(jnp.minimum(h1, 0.0)) - 1.0)
    h1 = h1 * mask_ref[...]

    # Stage in VMEM (bf16) so conv2's slab comes from Ref slices; the small
    # zero tail keeps the dy=2/dx>0 slices in bounds (only junk lanes read it).
    h1_ref[:, :S1] = h1.astype(jnp.bfloat16)
    h1_ref[:, S1:] = jnp.zeros((Cm, Wq), jnp.bfloat16)

    # ---- stage 2: conv2 + bn2, same flat-shift im2col ------------------------
    slab2 = jnp.concatenate(
        [h1_ref[:, dy * Wq + dx: dy * Wq + dx + S2]
         for dy in range(3) for dx in range(3)], axis=0)          # (9*Cm, S2) bf16
    acc2 = jnp.dot(w2t_ref[...], slab2,
                   preferred_element_type=jnp.float32) + b2_ref[...]   # (Cm, S2)

    # ---- residual add: interior slice of the fused downsample branch --------
    out = acc2 + res[:, Wq + 1: Wq + 1 + S2]                      # (Cm, S2) f32

    # TODO(synk): nn.Dropout(0.5) is train-mode stochastic; eval-mode identity here.
    if pooling:
        # Fused MaxPool2d(2, 2): pair-max neighbouring columns, then pool and
        # down-select even rows.  Columns stay at full W here (lane-dense
        # store, (H//2)*W lanes); the wrapper keeps every second one.
        colmax = jnp.maximum(out[:, :S2 - 1], out[:, 1:S2])
        rows = [jnp.maximum(colmax[:, (2 * hp) * Wq:(2 * hp) * Wq + W],
                            colmax[:, (2 * hp + 1) * Wq:(2 * hp + 1) * Wq + W])
                for hp in range(H // 2)]
        out_ref[0] = jnp.concatenate(rows, axis=1)                # (Cm, (H//2)*W)
    else:
        out_ref[0] = out                                          # (Cm, H*Wq)


# ----------------------------------------------------------------------------
# Wrapper glue: BN folding, channel-major weight flattening, pallas_call.
# ----------------------------------------------------------------------------
def fold_bn_into_conv(w_hwio, b, gamma, beta, mean, var, eps=1e-5):
    scale = gamma / jnp.sqrt(var + eps)                 # (Cout,)
    return w_hwio * scale, (b - mean) * scale + beta    # HWIO, (Cout,)


def _flatten_cout_major(w_hwio):
    # (3, 3, Cin, Cout) -> (Cout, 9*Cin), column order (dy*3+dx)*Cin + ci,
    # matching the in-kernel slab row order.
    co = w_hwio.shape[-1]
    return jnp.transpose(w_hwio, (3, 0, 1, 2)).reshape(co, -1)


def _vmem_limit_bytes():
    # Generation-aware budget: ~half the physical VMEM, clamped to [32, 96] MiB
    # (v5e/v6e: 128 MiB physical; v7x: 64 MiB).
    try:
        cap = pltpu.get_tpu_info().vmem_capacity_bytes
    except Exception:
        cap = 64 * 1024 * 1024
    return int(min(max(cap // 2, 32 * 1024 * 1024), 96 * 1024 * 1024))


def resblock_forward(x_nchw, params, *, pooling=False):
    N, Cin, H, W = x_nchw.shape
    if pooling:
        assert H % 2 == 0 and W % 2 == 0
    Wq, Hq = W + 4, H + 5            # pad 2 each side (+1 bottom slack row)
    S1, S2 = (H + 2) * Wq, H * Wq

    w1f, b1f = fold_bn_into_conv(params["w1"], params["b1"], params["g1"],
                                 params["be1"], params["m1"], params["v1"])
    w2f, b2f = fold_bn_into_conv(params["w2"], params["b2"], params["g2"],
                                 params["be2"], params["m2"], params["v2"])
    wdf, bdf = fold_bn_into_conv(params["wd"], params["bd"], params["gd"],
                                 params["bed"], params["md"], params["vd"])
    Cm = w1f.shape[-1]

    # conv1 / downsample fusion: both read x -> concat along Cout.
    w1t = jnp.concatenate([_flatten_cout_major(w1f),
                           _flatten_cout_major(wdf)], axis=0).astype(jnp.bfloat16)
    b1c = jnp.concatenate([b1f, bdf], axis=0).reshape(2 * Cm, 1).astype(jnp.float32)
    w2t = _flatten_cout_major(w2f).astype(jnp.bfloat16)            # (Cm, 9*Cm)
    b2c = b2f.reshape(Cm, 1).astype(jnp.float32)

    # Channel-major input, spatially flattened over the padded width Wq.
    xflat = jnp.pad(x_nchw, ((0, 0), (0, 0), (2, 3), (2, 2)))
    xflat = xflat.reshape(N, Cin, Hq * Wq).astype(jnp.bfloat16)

    # conv2 zero-padding mask over the extended grid (1 = real conv1 output).
    e1 = jnp.arange(H + 2)[:, None]
    f1 = jnp.arange(Wq)[None, :]
    mask = ((e1 >= 1) & (e1 <= H) & (f1 >= 1) & (f1 <= W))
    mask = mask.astype(jnp.float32).reshape(1, S1)

    out_cols = (H // 2) * W if pooling else S2
    out_shape = jax.ShapeDtypeStruct((N, Cm, out_cols), jnp.float32)
    out_spec = pl.BlockSpec((1, Cm, out_cols), lambda n: (n, 0, 0))

    kern = functools.partial(resblock_kernel, H=H, W=W, Cm=Cm, Wq=Wq,
                             pooling=pooling)

    out = pl.pallas_call(
        kern,
        out_shape=out_shape,
        grid_spec=pltpu.PrefetchScalarGridSpec(
            num_scalar_prefetch=0,
            grid=(N,),
            in_specs=[
                # TODO(synk): for very large H*W, band the spatial dim (pl.ANY
                # input + manual make_async_copy of row bands) so the resident
                # block fits v7x's 64 MiB VMEM; whole-image is optimal here.
                pl.BlockSpec((1, Cin, Hq * Wq), lambda n: (n, 0, 0)),
                pl.BlockSpec((1, S1), lambda n: (0, 0)),
                pl.BlockSpec((2 * Cm, 9 * Cin), lambda n: (0, 0)),
                pl.BlockSpec((2 * Cm, 1), lambda n: (0, 0)),
                pl.BlockSpec((Cm, 9 * Cm), lambda n: (0, 0)),
                pl.BlockSpec((Cm, 1), lambda n: (0, 0)),
            ],
            out_specs=out_spec,
            # conv1-output staging buffer (+1 row of slack for the last taps)
            scratch_shapes=[pltpu.VMEM((Cm, (H + 3) * Wq), jnp.bfloat16)],
        ),
        compiler_params=pltpu.CompilerParams(
            dimension_semantics=("parallel",),
            vmem_limit_bytes=_vmem_limit_bytes()),
    )(xflat, mask, w1t, b1c, w2t, b2c)

    if pooling:
        # Rows already pooled & downsampled in-kernel; keep every 2nd column.
        return out.reshape(N, Cm, H // 2, W)[:, :, :, 0::2]
    # Drop the 4 junk columns per row carried by the flat padded-width layout.
    return out.reshape(N, Cm, H, Wq)[:, :, :, :W]


# ----------------------------------------------------------------------------
# Pure-JAX f32 reference (explicit convs + BN) for correctness checking.
# ----------------------------------------------------------------------------
def resblock_ref(x_nchw, params, *, pooling=False, eps=1e-5):
    x = jnp.transpose(x_nchw, (0, 2, 3, 1))

    def conv(inp, w, b):
        y = lax.conv_general_dilated(
            inp, w, window_strides=(1, 1), padding=[(1, 1), (1, 1)],
            dimension_numbers=("NHWC", "HWIO", "NHWC"))
        return y + b

    def bn(inp, g, be, m, v):
        return (inp - m) / jnp.sqrt(v + eps) * g + be

    h = conv(x, params["w1"], params["b1"])
    h = bn(h, params["g1"], params["be1"], params["m1"], params["v1"])
    h = jnp.where(h > 0, h, jnp.exp(jnp.minimum(h, 0.0)) - 1.0)      # ELU
    h = conv(h, params["w2"], params["b2"])
    h = bn(h, params["g2"], params["be2"], params["m2"], params["v2"])
    r = conv(x, params["wd"], params["bd"])
    r = bn(r, params["gd"], params["bed"], params["md"], params["vd"])
    out = h + r
    if pooling:
        N, H, W, C = out.shape
        out = out.reshape(N, H // 2, 2, W // 2, 2, C).max(axis=(2, 4))
    return jnp.transpose(out, (0, 3, 1, 2))


# ----------------------------------------------------------------------------
# Deterministic parameter init (shapes from ResBlock.__init__, HWIO weights)
# ----------------------------------------------------------------------------
def make_params(key, cin, cout):
    ks = jax.random.split(key, 16)
    f32 = jnp.float32

    def conv_w(k, ci, co):
        return 0.1 * jax.random.normal(k, (3, 3, ci, co), f32)

    return {
        "w1": conv_w(ks[0], cin, cout),
        "b1": 0.1 * jax.random.normal(ks[1], (cout,), f32),
        "g1": jax.random.uniform(ks[2], (cout,), f32, 0.5, 1.5),
        "be1": 0.1 * jax.random.normal(ks[3], (cout,), f32),
        "m1": 0.1 * jax.random.normal(ks[4], (cout,), f32),
        "v1": jax.random.uniform(ks[5], (cout,), f32, 0.5, 1.5),
        "w2": conv_w(ks[6], cout, cout),
        "b2": 0.1 * jax.random.normal(ks[7], (cout,), f32),
        "g2": jax.random.uniform(ks[8], (cout,), f32, 0.5, 1.5),
        "be2": 0.1 * jax.random.normal(ks[9], (cout,), f32),
        "m2": 0.1 * jax.random.normal(ks[10], (cout,), f32),
        "v2": jax.random.uniform(ks[11], (cout,), f32, 0.5, 1.5),
        "wd": conv_w(ks[12], cin, cout),
        "bd": 0.1 * jax.random.normal(ks[13], (cout,), f32),
        "gd": jax.random.uniform(ks[14], (cout,), f32, 0.5, 1.5),
        "bed": 0.1 * jax.random.normal(ks[15], (cout,), f32),
        "md": jnp.zeros((cout,), f32),
        "vd": jnp.ones((cout,), f32),
    }


if __name__ == "__main__":
    key = jax.random.PRNGKey(0)
    k_x, k_p = jax.random.split(key)

    N, Cin, Cout, H, W = 2, 4, 8, 16, 16        # stride=1, downsample=True
    x = jax.random.normal(k_x, (N, Cin, H, W), jnp.float32)
    params = make_params(k_p, Cin, Cout)

    for pooling in (False, True):
        fwd = jax.jit(functools.partial(resblock_forward, pooling=pooling))
        out = jax.block_until_ready(fwd(x, params))
        ref = resblock_ref(x, params, pooling=pooling)
        assert out.shape == ref.shape, (out.shape, ref.shape)
        max_err = float(jnp.max(jnp.abs(out - ref)))
        # bf16 MXU operands vs the f32 reference -> loose-but-meaningful tolerance
        assert jnp.allclose(out, ref, atol=8e-2, rtol=5e-2), (pooling, max_err)

    print("KERNEL_OK")
</pallas_src>

<mosaic_0001>
module attributes {stable_mosaic.version = 11 : i64} {
  func.func @resblock_kernel(%arg0: i32, %arg1: memref<1x4x420xbf16, #tpu.memory_space<vmem>>, %arg2: memref<1x360xf32, #tpu.memory_space<vmem>>, %arg3: memref<16x36xbf16, #tpu.memory_space<vmem>>, %arg4: memref<16x1xf32, #tpu.memory_space<vmem>>, %arg5: memref<8x72xbf16, #tpu.memory_space<vmem>>, %arg6: memref<8x1xf32, #tpu.memory_space<vmem>>, %arg7: memref<1x8x320xf32, #tpu.memory_space<vmem>>, %arg8: memref<8x380xbf16, #tpu.memory_space<vmem>>) attributes {dimension_semantics = [#tpu.dimension_semantics<parallel>], iteration_bounds = array<i64: 2>, scalar_prefetch = 0 : i64, scratch_operands = 1 : i64, tpu.core_type = #tpu.core_type<tc>, window_params = [{transform_indices = @transform_0, window_bounds = array<i64: 1, 4, 420>}, {pipeline_mode = #tpu.pipeline_mode<synchronous>, transform_indices = @transform_1, window_bounds = array<i64: 1, 360>}, {pipeline_mode = #tpu.pipeline_mode<synchronous>, transform_indices = @transform_2, window_bounds = array<i64: 16, 36>}, {pipeline_mode = #tpu.pipeline_mode<synchronous>, transform_indices = @transform_3, window_bounds = array<i64: 16, 1>}, {pipeline_mode = #tpu.pipeline_mode<synchronous>, transform_indices = @transform_4, window_bounds = array<i64: 8, 72>}, {pipeline_mode = #tpu.pipeline_mode<synchronous>, transform_indices = @transform_5, window_bounds = array<i64: 8, 1>}, {transform_indices = @transform_6, window_bounds = array<i64: 1, 8, 320>}]} {
    %c0 = arith.constant 0 : index
    %c0_0 = arith.constant 0 : index
    %c0_1 = arith.constant 0 : index
    %0 = vector.load %arg1[%c0, %c0_0, %c0_1] : memref<1x4x420xbf16, #tpu.memory_space<vmem>>, vector<1x4x360xbf16>
    %1 = vector.shape_cast %0 : vector<1x4x360xbf16> to vector<4x360xbf16>
    %c0_2 = arith.constant 0 : index
    %c0_3 = arith.constant 0 : index
    %c1 = arith.constant 1 : index
    %2 = vector.load %arg1[%c0_2, %c0_3, %c1] : memref<1x4x420xbf16, #tpu.memory_space<vmem>>, vector<1x4x360xbf16>
    %3 = vector.shape_cast %2 : vector<1x4x360xbf16> to vector<4x360xbf16>
    %c0_4 = arith.constant 0 : index
    %c0_5 = arith.constant 0 : index
    %c2 = arith.constant 2 : index
    %4 = vector.load %arg1[%c0_4, %c0_5, %c2] : memref<1x4x420xbf16, #tpu.memory_space<vmem>>, vector<1x4x360xbf16>
    %5 = vector.shape_cast %4 : vector<1x4x360xbf16> to vector<4x360xbf16>
    %c0_6 = arith.constant 0 : index
    %c0_7 = arith.constant 0 : index
    %c20 = arith.constant 20 : index
    %6 = vector.load %arg1[%c0_6, %c0_7, %c20] : memref<1x4x420xbf16, #tpu.memory_space<vmem>>, vector<1x4x360xbf16>
    %7 = vector.shape_cast %6 : vector<1x4x360xbf16> to vector<4x360xbf16>
    %c0_8 = arith.constant 0 : index
    %c0_9 = arith.constant 0 : index
    %c21 = arith.constant 21 : index
    %8 = vector.load %arg1[%c0_8, %c0_9, %c21] : memref<1x4x420xbf16, #tpu.memory_space<vmem>>, vector<1x4x360xbf16>
    %9 = vector.shape_cast %8 : vector<1x4x360xbf16> to vector<4x360xbf16>
    %c0_10 = arith.constant 0 : index
    %c0_11 = arith.constant 0 : index
    %c22 = arith.constant 22 : index
    %10 = vector.load %arg1[%c0_10, %c0_11, %c22] : memref<1x4x420xbf16, #tpu.memory_space<vmem>>, vector<1x4x360xbf16>
    %11 = vector.shape_cast %10 : vector<1x4x360xbf16> to vector<4x360xbf16>
    %c0_12 = arith.constant 0 : index
    %c0_13 = arith.constant 0 : index
    %c40 = arith.constant 40 : index
    %12 = vector.load %arg1[%c0_12, %c0_13, %c40] : memref<1x4x420xbf16, #tpu.memory_space<vmem>>, vector<1x4x360xbf16>
    %13 = vector.shape_cast %12 : vector<1x4x360xbf16> to vector<4x360xbf16>
    %c0_14 = arith.constant 0 : index
    %c0_15 = arith.constant 0 : index
    %c41 = arith.constant 41 : index
    %14 = vector.load %arg1[%c0_14, %c0_15, %c41] : memref<1x4x420xbf16, #tpu.memory_space<vmem>>, vector<1x4x360xbf16>
    %15 = vector.shape_cast %14 : vector<1x4x360xbf16> to vector<4x360xbf16>
    %c0_16 = arith.constant 0 : index
    %c0_17 = arith.constant 0 : index
    %c42 = arith.constant 42 : index
    %16 = vector.load %arg1[%c0_16, %c0_17, %c42] : memref<1x4x420xbf16, #tpu.memory_space<vmem>>, vector<1x4x360xbf16>
    %17 = vector.shape_cast %16 : vector<1x4x360xbf16> to vector<4x360xbf16>
    %18 = tpu.concatenate %1, %3, %5, %7, %9, %11, %13, %15, %17 in 0 : vector<4x360xbf16>, vector<4x360xbf16>, vector<4x360xbf16>, vector<4x360xbf16>, vector<4x360xbf16>, vector<4x360xbf16>, vector<4x360xbf16>, vector<4x360xbf16>, vector<4x360xbf16> -> vector<36x360xbf16>
    %c0_18 = arith.constant 0 : index
    %c0_19 = arith.constant 0 : index
    %19 = vector.load %arg3[%c0_18, %c0_19] : memref<16x36xbf16, #tpu.memory_space<vmem>>, vector<16x36xbf16>
    %cst = arith.constant dense<0.000000e+00> : vector<16x360xf32>
    %20 = tpu.matmul %19, %18, %cst {dimension_numbers = #tpu.dot_dimension_numbers<[1], [0], [0], [1], [0, 0, 1, 1], [], []>} : vector<16x36xbf16>, vector<36x360xbf16>, vector<16x360xf32> -> vector<16x360xf32>
    %c0_20 = arith.constant 0 : index
    %c0_21 = arith.constant 0 : index
    %21 = vector.load %arg4[%c0_20, %c0_21] : memref<16x1xf32, #tpu.memory_space<vmem>>, vector<16x1xf32>
    %22 = vector.broadcast %21 : vector<16x1xf32> to vector<16x360xf32>
    %23 = arith.addf %20, %22 : vector<16x360xf32>
    %24 = vector.extract_strided_slice %23 {offsets = [0, 0], sizes = [8, 360], strides = [1, 1]} : vector<16x360xf32> to vector<8x360xf32>
    %25 = vector.extract_strided_slice %23 {offsets = [8, 0], sizes = [8, 360], strides = [1, 1]} : vector<16x360xf32> to vector<8x360xf32>
    %cst_22 = arith.constant 0.000000e+00 : f32
    %26 = vector.broadcast %cst_22 : f32 to vector<8x360xf32>
    %27 = arith.cmpf ogt, %24, %26 : vector<8x360xf32>
    %cst_23 = arith.constant 0.000000e+00 : f32
    %28 = vector.broadcast %cst_23 : f32 to vector<8x360xf32>
    %29 = arith.minimumf %24, %28 : vector<8x360xf32>
    %30 = math.exp %29 : vector<8x360xf32>
    %cst_24 = arith.constant 1.000000e+00 : f32
    %31 = vector.broadcast %cst_24 : f32 to vector<8x360xf32>
    %32 = arith.subf %30, %31 : vector<8x360xf32>
    %33 = arith.select %27, %24, %32 : vector<8x360xi1>, vector<8x360xf32>
    %c0_25 = arith.constant 0 : index
    %c0_26 = arith.constant 0 : index
    %34 = vector.load %arg2[%c0_25, %c0_26] : memref<1x360xf32, #tpu.memory_space<vmem>>, vector<1x360xf32>
    %35 = vector.broadcast %34 : vector<1x360xf32> to vector<8x360xf32>
    %36 = arith.mulf %33, %35 : vector<8x360xf32>
    %37 = arith.truncf %36 : vector<8x360xf32> to vector<8x360xbf16>
    %c0_27 = arith.constant 0 : index
    %c0_28 = arith.constant 0 : index
    %38 = vector.load %arg8[%c0_27, %c0_28] : memref<8x380xbf16, #tpu.memory_space<vmem>>, vector<8x360xbf16>
    tpu.vector_store %arg8[%c0_27, %c0_28], %37 {strides = array<i32>} : memref<8x380xbf16, #tpu.memory_space<vmem>>, vector<8x360xbf16>,
    %cst_29 = arith.constant 0.000000e+00 : bf16
    %39 = vector.broadcast %cst_29 : bf16 to vector<8x20xbf16>
    %c0_30 = arith.constant 0 : index
    %c360 = arith.constant 360 : index
    %40 = vector.load %arg8[%c0_30, %c360] : memref<8x380xbf16, #tpu.memory_space<vmem>>, vector<8x20xbf16>
    tpu.vector_store %arg8[%c0_30, %c360], %39 {strides = array<i32>} : memref<8x380xbf16, #tpu.memory_space<vmem>>, vector<8x20xbf16>,
    %c0_31 = arith.constant 0 : index
    %c0_32 = arith.constant 0 : index
    %41 = vector.load %arg8[%c0_31, %c0_32] : memref<8x380xbf16, #tpu.memory_space<vmem>>, vector<8x320xbf16>
    %c0_33 = arith.constant 0 : index
    %c1_34 = arith.constant 1 : index
    %42 = vector.load %arg8[%c0_33, %c1_34] : memref<8x380xbf16, #tpu.memory_space<vmem>>, vector<8x320xbf16>
    %c0_35 = arith.constant 0 : index
    %c2_36 = arith.constant 2 : index
    %43 = vector.load %arg8[%c0_35, %c2_36] : memref<8x380xbf16, #tpu.memory_space<vmem>>, vector<8x320xbf16>
    %c0_37 = arith.constant 0 : index
    %c20_38 = arith.constant 20 : index
    %44 = vector.load %arg8[%c0_37, %c20_38] : memref<8x380xbf16, #tpu.memory_space<vmem>>, vector<8x320xbf16>
    %c0_39 = arith.constant 0 : index
    %c21_40 = arith.constant 21 : index
    %45 = vector.load %arg8[%c0_39, %c21_40] : memref<8x380xbf16, #tpu.memory_space<vmem>>, vector<8x320xbf16>
    %c0_41 = arith.constant 0 : index
    %c22_42 = arith.constant 22 : index
    %46 = vector.load %arg8[%c0_41, %c22_42] : memref<8x380xbf16, #tpu.memory_space<vmem>>, vector<8x320xbf16>
    %c0_43 = arith.constant 0 : index
    %c40_44 = arith.constant 40 : index
    %47 = vector.load %arg8[%c0_43, %c40_44] : memref<8x380xbf16, #tpu.memory_space<vmem>>, vector<8x320xbf16>
    %c0_45 = arith.constant 0 : index
    %c41_46 = arith.constant 41 : index
    %48 = vector.load %arg8[%c0_45, %c41_46] : memref<8x380xbf16, #tpu.memory_space<vmem>>, vector<8x320xbf16>
    %c0_47 = arith.constant 0 : index
    %c42_48 = arith.constant 42 : index
    %49 = vector.load %arg8[%c0_47, %c42_48] : memref<8x380xbf16, #tpu.memory_space<vmem>>, vector<8x320xbf16>
    %50 = tpu.concatenate %41, %42, %43, %44, %45, %46, %47, %48, %49 in 0 : vector<8x320xbf16>, vector<8x320xbf16>, vector<8x320xbf16>, vector<8x320xbf16>, vector<8x320xbf16>, vector<8x320xbf16>, vector<8x320xbf16>, vector<8x320xbf16>, vector<8x320xbf16> -> vector<72x320xbf16>
    %c0_49 = arith.constant 0 : index
    %c0_50 = arith.constant 0 : index
    %51 = vector.load %arg5[%c0_49, %c0_50] : memref<8x72xbf16, #tpu.memory_space<vmem>>, vector<8x72xbf16>
    %cst_51 = arith.constant dense<0.000000e+00> : vector<8x320xf32>
    %52 = tpu.matmul %51, %50, %cst_51 {dimension_numbers = #tpu.dot_dimension_numbers<[1], [0], [0], [1], [0, 0, 1, 1], [], []>} : vector<8x72xbf16>, vector<72x320xbf16>, vector<8x320xf32> -> vector<8x320xf32>
    %c0_52 = arith.constant 0 : index
    %c0_53 = arith.constant 0 : index
    %53 = vector.load %arg6[%c0_52, %c0_53] : memref<8x1xf32, #tpu.memory_space<vmem>>, vector<8x1xf32>
    %54 = vector.broadcast %53 : vector<8x1xf32> to vector<8x320xf32>
    %55 = arith.addf %52, %54 : vector<8x320xf32>
    %56 = vector.extract_strided_slice %25 {offsets = [0, 21], sizes = [8, 320], strides = [1, 1]} : vector<8x360xf32> to vector<8x320xf32>
    %57 = arith.addf %55, %56 : vector<8x320xf32>
    %c0_54 = arith.constant 0 : index
    %c0_55 = arith.constant 0 : index
    %c0_56 = arith.constant 0 : index
    %58 = vector.load %arg7[%c0_54, %c0_55, %c0_56] : memref<1x8x320xf32, #tpu.memory_space<vmem>>, vector<1x8x320xf32>
    %59 = vector.shape_cast %58 : vector<1x8x320xf32> to vector<8x320xf32>
    %60 = vector.shape_cast %57 : vector<8x320xf32> to vector<1x8x320xf32>
    tpu.vector_store %arg7[%c0_54, %c0_55, %c0_56], %60 {strides = array<i32>} : memref<1x8x320xf32, #tpu.memory_space<vmem>>, vector<1x8x320xf32>,
    return
  }
  func.func @transform_0(%arg0: i32) -> (i32, i32, i32) {
    %c0_i32 = arith.constant 0 : i32
    %c0_i32_0 = arith.constant 0 : i32
    %c0_i32_1 = arith.constant 0 : i32
    return %arg0, %c0_i32, %c0_i32_0 : i32, i32, i32
  }
  func.func @transform_1(%arg0: i32) -> (i32, i32) {
    %c0_i32 = arith.constant 0 : i32
    %c0_i32_0 = arith.constant 0 : i32
    %c0_i32_1 = arith.constant 0 : i32
    return %c0_i32, %c0_i32_0 : i32, i32
  }
  func.func @transform_2(%arg0: i32) -> (i32, i32) {
    %c0_i32 = arith.constant 0 : i32
    %c0_i32_0 = arith.constant 0 : i32
    %c0_i32_1 = arith.constant 0 : i32
    return %c0_i32, %c0_i32_0 : i32, i32
  }
  func.func @transform_3(%arg0: i32) -> (i32, i32) {
    %c0_i32 = arith.constant 0 : i32
    %c0_i32_0 = arith.constant 0 : i32
    %c0_i32_1 = arith.constant 0 : i32
    return %c0_i32, %c0_i32_0 : i32, i32
  }
  func.func @transform_4(%arg0: i32) -> (i32, i32) {
    %c0_i32 = arith.constant 0 : i32
    %c0_i32_0 = arith.constant 0 : i32
    %c0_i32_1 = arith.constant 0 : i32
    return %c0_i32, %c0_i32_0 : i32, i32
  }
  func.func @transform_5(%arg0: i32) -> (i32, i32) {
    %c0_i32 = arith.constant 0 : i32
    %c0_i32_0 = arith.constant 0 : i32
    %c0_i32_1 = arith.constant 0 : i32
    return %c0_i32, %c0_i32_0 : i32, i32
  }
  func.func @transform_6(%arg0: i32) -> (i32, i32, i32) {
    %c0_i32 = arith.constant 0 : i32
    %c0_i32_0 = arith.constant 0 : i32
    %c0_i32_1 = arith.constant 0 : i32
    return %arg0, %c0_i32, %c0_i32_0 : i32, i32, i32
  }
}

</mosaic_0001>

<bundles_post_ra>
// kernel: resblock_forward.1
= control target key start
LH: loop header
LB: loop body
LE: loop exit
PB: predicated region body
PF: predicated region fallthrough
CT: control target
= control target key end

     0   :  { %s1071_s21 = smov 0   ;;  %s1317_s0 = inlined_call_operand.vmem [shape: bf16[2,4,420], index: 0, kind: input, shape index: {}]   ;;  %s1318_s1 = inlined_call_operand.vmem [shape: f32[1,360], index: 1, kind: input, shape index: {}]   ;;  %s1319_s2 = inlined_call_operand.vmem [shape: bf16[16,36], index: 2, kind: input, shape index: {}]   ;;  %s1320_s3 = inlined_call_operand.vmem [shape: f32[16,1], index: 3, kind: input, shape index: {}]   ;;  %s1321_s4 = inlined_call_operand.vmem [shape: bf16[8,72], index: 4, kind: input, shape index: {}]   ;;  %s1322_s5 = inlined_call_operand.vmem [shape: f32[8,1], index: 5, kind: input, shape index: {}]   ;;  %s1323_s6 = inlined_call_operand.vmem [shape: f32[2,8,320], index: 6, kind: output, shape index: {}]  }
   0x1 LB: > { %s917_s22 = sadd.s32 4294967295, %s1022_s21   ;;  %p921_p0 = scmp.ge.s32.totalorder %s1022_s21, 1  ;;  %s1022_s21 = sphi %s1071_s21, %s16_s21  }
   0x2   : > { %p212_p1 = scmp.lt.s32.totalorder %s1022_s21, 3 }
   0x4   : > { %p213_p2 = pnand %p921_p0, %p212_p1 }
   0x5   : > { %p242_p3 = scmp.lt.s32.totalorder (!%p213_p2), %s917_s22, 1  ;;  %s1025_s27 = smov (!%p213_p2), 86  }
   0x6   : > { %216 = sbr.rel (%p213_p2) target bundleno = 778 (0x30a), region = 44  ;;  %s1027_s28 = smov (!%p213_p2), 107  }
   0x7   : > { %s1028_s29 = smov (!%p213_p2), 106   ;;  %s1029_s30 = smov (!%p213_p2), 88  }
   0x8   : > { %s1030_s7 = smov (!%p213_p2), 87   ;;  %s1031_s8 = smov (!%p213_p2), 127  }
   0x9   : > { %s1033_s9 = smov (!%p213_p2), 126   ;;  %s1035_s10 = smov (!%p213_p2), 108  }
   0xb   : > { %v260_v0 = vlaneseq  ;;  %v1024_v1 = vmov 1983009808   ;;  %s1325_s22 = smov (!%p242_p3, %s917_s22), 1  ;;  %v1026_v17 = vmov 0.0   ;;  %vm1032_vm0 = vmmov 0   ;;  %v447_v30 = vld [vmem:[%s1320_s3] sm:$0xff] }
   0xc   : > { %v258_v2 = vunpack.c.l.s4 %v1024_v1  ;;  %s942_s23 = sshll.u32 %s1325_s22, 3  ;;  %955 = vmatprep.subr.bf16.mxu1 %v1026_v17  ;;  %961 = vmatprep.mubr.msk.bf16.mxu1 %vm1032_vm0, %v1026_v17  ;;  %v1034_v28 = vmov 0   ;;  %vm390_vm1 = vcmask 703488   ;;  %vm394_vm2 = vcmask 1041408   ;;  %s979_s25 = smul.u32 24, %s1325_s22 }
   0xd   : > { %v1081_v3 = vshrl.u32 %v260_v0, 7  ;;  %s246_s26 = scalar_lea.vmem %s1317_s0, %s942_s23  ;;  %509 = vmatprep.mubr.bf16.mxu0 %v1034_v28  ;;  %1000 = vset.pattern.permute.xlu1 %v1034_v28  ;;  %vm326_vm3 = vcmask 867328   ;;  %vm355_vm4 = vcmask 719872   ;;  %vm317_vm5 = vcmask 875520  }
   0xe   : > { %v259_v4 = vunpack.c.0.s8 %v258_v2  ;;  %v254_v6 = vld [vmem:[%s246_s26] sm:$0xff]  ;;  %1001 = vset.pattern.permute.xlu0 %v1034_v28  ;;  %vm376_vm6 = vcmask 711680   ;;  %vm404_vm7 = vcmask 1043456   ;;  %vm411_vm8 = vcmask 1045504  }
   0xf   : > { %v253_v7 = vld [vmem:[%s246_s26] sm:$0x3f]  ;;  %v330_v10 = vcombine.high %v254_v6, %v254_v6  ;;  %v359_v22 = vcombine.low %v254_v6, %v254_v6  ;;  %vm287_vm9 = vcmask 1039360   ;;  %vm298_vm10 = vcmask 1031168  }
  0x10   : > { %v262_v5 = vsub.s32 %v259_v4, %v1081_v3  ;;  %v272_v11 = vcombine.low %v253_v7, %v253_v7  ;;  %v256_v14 = vcombine.high %v253_v7, %v253_v7  ;;  %vm308_vm11 = vcmask 883712  }
  0x11   : > { %vm464_vm12 = vcmask 293888   ;;  %vm613_vm14 = vcmask 846848  }
  0x12   : > { %v337_v8 = vrot.slane %v254_v6, %v262_v5  ;;  %v1088_v9 = vrot.slane %v253_v7, %v262_v5  ;;  %v344_v12 = vrot.slane %v330_v10, %v262_v5  ;;  %v279_v16 = vrot.slane %v272_v11, %v262_v5 }
  0x13   : > { %v1098_v18 = vrot.slane %v256_v14, %v262_v5  ;;  %v366_v24 = vrot.slane %v359_v22, %v262_v5 }
  0x14   : > { %382 = vrot.lane.b32.xlu0 %v337_v8, %s1025_s27  ;;  %v380_v13 = vcombine.high %v337_v8, %v337_v8  ;;  %386 = vrot.lane.b32.xlu1 %v344_v12, %s1025_s27  ;;  %v1094_v15 = vcombine.high %v1088_v9, %v1088_v9  ;;  %v280_v19 = vcombine.high %v279_v16, %v279_v16 }
  0x15   : > { %v381_v20 = vcombine.high %v344_v12, %v344_v12  ;;  %v346_v21 = vcombine.low %v344_v12, %v344_v12  ;;  %v345_v23 = vcombine.low %v337_v8, %v337_v8  ;;  %v367_v25 = vcombine.low %v366_v24, %v366_v24 }
  0x16   : > { %v291_v26 = vcombine.low %v1098_v18, %v1098_v18  ;;  %v290_v27 = vcombine.low %v1088_v9, %v1088_v9  ;;  %v301_v29 = vcombine.low %v279_v16, %v279_v16 }
  0x18   : > { %384 = vrot.lane.b32.xlu0 %v380_v13, %s1025_s27  ;;  %313 = vrot.lane.b32.xlu1 %v1094_v15, %s1027_s28 }
  0x1c   : > { %315 = vrot.lane.b32.xlu0 %v1098_v18, %s1027_s28  ;;  %322 = vrot.lane.b32.xlu1 %v280_v19, %s1028_s29 }
  0x20   : > { %324 = vrot.lane.b32.xlu0 %v1088_v9, %s1028_s29  ;;  %388 = vrot.lane.b32.xlu1 %v381_v20, %s1025_s27 }
  0x24   : > { %311 = vrot.lane.b32.xlu0 %v1088_v9, %s1027_s28  ;;  %320 = vrot.lane.b32.xlu1 %v279_v16, %s1028_s29 }
  0x28   : > { %349 = vrot.lane.b32.xlu0 %v337_v8, %s1029_s30  ;;  %351 = vrot.lane.b32.xlu1 %v346_v21, %s1029_s30 }
  0x2c   : > { %347 = vrot.lane.b32.xlu0 %v345_v23, %s1029_s30  ;;  %370 = vrot.lane.b32.xlu1 %v366_v24, %s1030_s7 }
  0x30   : > { %372 = vrot.lane.b32.xlu0 %v345_v23, %s1030_s7  ;;  %353 = vrot.lane.b32.xlu1 %v344_v12, %s1029_s30 }
  0x34   : > { %368 = vrot.lane.b32.xlu0 %v367_v25, %s1030_s7  ;;  %283 = vrot.lane.b32.xlu1 %v280_v19, %s1031_s8 }
  0x38   : > { %285 = vrot.lane.b32.xlu0 %v1088_v9, %s1031_s8  ;;  %374 = vrot.lane.b32.xlu1 %v337_v8, %s1030_s7 }
  0x3c   : > { %281 = vrot.lane.b32.xlu0 %v279_v16, %s1031_s8  ;;  %294 = vrot.lane.b32.xlu1 %v1088_v9, %s1033_s9 }
  0x40   : > { %296 = vrot.lane.b32.xlu0 %v291_v26, %s1033_s9  ;;  %292 = vrot.lane.b32.xlu1 %v290_v27, %s1033_s9 }
  0x44   : > { %304 = vrot.lane.b32.xlu0 %v279_v16, %s1035_s10  ;;  %306 = vrot.lane.b32.xlu1 %v290_v27, %s1035_s10 }
  0x48   : > { %302 = vrot.lane.b32.xlu0 %v301_v29, %s1035_s10  ;;  %451 = vperm.xlu1 %1000, %v447_v30  }
  0x86   : > { %v383_v31 = vpop.permute.xlu0 %382  ;;  %v387_v32 = vpop.permute.xlu1 %386 }
  0x8a   : > { %v385_v33 = vpop.permute.xlu0 %384  ;;  %v314_v36 = vpop.permute.xlu1 %313 }
  0x8b   : > { %v392_v34 = vsel %vm390_vm1, %v385_v33, %v387_v32  ;;  %v391_v35 = vsel %vm390_vm1, %v383_v31, %v385_v33 }
  0x8c   : > { %926 = vmatprep.subr.msk.bf16.mxu0 %vm394_vm2, %v392_v34  ;;  %v469_v37 = vsel %vm394_vm2, %v391_v35, 0 }
  0x8d   : > { %488 = vmatpush1.bf16.msra.mxu0 %v469_v37 }
  0x8e   : > { %v316_v38 = vpop.permute.xlu0 %315  ;;  %v323_v39 = vpop.permute.xlu1 %322 }
  0x8f   : > { %v319_v52 = vsel %vm317_vm5, %v314_v36, %v316_v38 }
  0x92   : > { %v325_v40 = vpop.permute.xlu0 %324  ;;  %v389_v41 = vpop.permute.xlu1 %388 }
  0x93   : > { %v393_v42 = vsel %vm390_vm1, %v387_v32, %v389_v41  ;;  %v328_v49 = vsel %vm326_vm3, %v323_v39, %v325_v40  ;;  %v429_v7 = vsel %vm394_vm2, %v316_v38, %v325_v40 }
  0x94   : > { %v475_v44 = vsel %vm394_vm2, %v393_v42, 0  ;;  %v426_v53 = vsel %vm394_vm2, %v319_v52, %v328_v49 }
  0x95   : > { %956 = vmatpush3.bf16.msra.mxu1 %v475_v44 }
  0x96   : > { %v312_v43 = vpop.permute.xlu0 %311  ;;  %v321_v45 = vpop.permute.xlu1 %320  ;;  %957 = vmatprep.subr.bf16.mxu1 %v1026_v17 }
  0x97   : > { %v327_v55 = vsel %vm326_vm3, %v321_v45, %v323_v39  ;;  %v318_v61 = vsel %vm317_vm5, %v312_v43, %v314_v36 }
  0x98   : > { %v423_v62 = vsel %vm394_vm2, %v318_v61, %v327_v55 }
  0x9a   : > { %v350_v46 = vpop.permute.xlu0 %349  ;;  %v352_v47 = vpop.permute.xlu1 %351 }
  0x9b   : > { %v357_v50 = vsel %vm355_vm4, %v350_v46, %v352_v47 }
  0x9c   : > { %v433_v57 = vsel %vm404_vm7, %v426_v53, %v357_v50  ;;  %v591_v53 = vsub.s32 2, %v1081_v3 }
  0x9e   : > { %v348_v48 = vpop.permute.xlu0 %347  ;;  %v371_v51 = vpop.permute.xlu1 %370 }
  0x9f   : > { %v356_v58 = vsel %vm355_vm4, %v348_v48, %v350_v46 }
  0xa0   : > { %v431_v1 = vsel %vm404_vm7, %v423_v62, %v356_v58  ;;  %v583_v58 = vsub.s32 0, %v1081_v3 }
  0xa2   : > { %v373_v54 = vpop.permute.xlu0 %372  ;;  %v354_v59 = vpop.permute.xlu1 %353 }
  0xa3   : > { %v378_v56 = vsel %vm376_vm6, %v371_v51, %v373_v54  ;;  %v358_v5 = vsel %vm355_vm4, %v352_v47, %v354_v59  ;;  %v587_v59 = vsub.s32 1, %v1081_v3 }
  0xa4   : > { %v440_v60 = vsel %vm411_vm8, %v433_v57, %v378_v56  ;;  %v435_v11 = vsel %vm404_vm7, %v429_v7, %v358_v5 }
  0xa5   : > { %489 = vmatprep.subr.bf16.mxu0 %v440_v60 }
  0xa6   : > { %v369_v63 = vpop.permute.xlu0 %368  ;;  %v284_v2 = vpop.permute.xlu1 %283 }
  0xa7   : > { %v377_v0 = vsel %vm376_vm6, %v369_v63, %v371_v51 }
  0xa8   : > { %v437_v4 = vsel %vm411_vm8, %v431_v1, %v377_v0 }
  0xa9   : > { %490 = vmatpush1.bf16.msra.mxu0 %v437_v4 }
  0xaa   : > { %v286_v6 = vpop.permute.xlu0 %285  ;;  %v375_v8 = vpop.permute.xlu1 %374 }
  0xab   : > { %v379_v10 = vsel %vm376_vm6, %v373_v54, %v375_v8  ;;  %v289_v20 = vsel %vm287_vm9, %v284_v2, %v286_v6  ;;  %v403_v23 = vsel %vm394_vm2, %v1098_v18, %v286_v6  ;;  %v1006_v18 = vld [vmem:[%s1319_s2] sm:$0xff]  }
  0xac   : > { %v443_v13 = vsel %vm411_vm8, %v435_v11, %v379_v10  ;;  %v400_v25 = vsel %vm394_vm2, %v1094_v15, %v289_v20  ;;  %v579_v54 = vld [vmem:[%s1318_s1] sm:$0x7] }
  0xad   : > { %958 = vmatpush3.bf16.msra.mxu1 %v443_v13  ;;  %v592_v56 = vrot.slane %v579_v54, %v591_v53  ;;  %v584_v1 = vrot.slane %v579_v54, %v583_v58  ;;  %v448_v13 = vld [vmem:[%s1320_s3 + $0x8] sm:$0xff] }
  0xae   : > { %v282_v12 = vpop.permute.xlu0 %281  ;;  %v295_v14 = vpop.permute.xlu1 %294  ;;  %959 = vmatprep.subr.bf16.mxu1 %v1026_v17 }
  0xaf   : > { %v288_v24 = vsel %vm287_vm9, %v282_v12, %v284_v2  ;;  %v588_v2 = vrot.slane %v579_v54, %v587_v59 }
  0xb0   : > { %v397_v33 = vsel %vm394_vm2, %v1088_v9, %v288_v24 }
  0xb2   : > { %v297_v16 = vpop.permute.xlu0 %296  ;;  %v293_v19 = vpop.permute.xlu1 %292 }
  0xb3   : > { %v300_v21 = vsel %vm298_vm10, %v295_v14, %v297_v16  ;;  %v410_v26 = vsel %vm404_vm7, %v403_v23, %v297_v16  ;;  %v299_v27 = vsel %vm298_vm10, %v293_v19, %v295_v14 }
  0xb4   : > { %v408_v32 = vsel %vm404_vm7, %v400_v25, %v300_v21  ;;  %v406_v36 = vsel %vm404_vm7, %v397_v33, %v299_v27 }
  0xb6   : > { %v305_v22 = vpop.permute.xlu0 %304  ;;  %v307_v29 = vpop.permute.xlu1 %306 }
  0xb7   : > { %v310_v30 = vsel %vm308_vm11, %v305_v22, %v307_v29  ;;  %v419_v31 = vsel %vm411_vm8, %v410_v26, %v307_v29 }
  0xb8   : > { %960 = vmatpush3.bf16.msra.mxu1 %v419_v31  ;;  %v416_v34 = vsel %vm411_vm8, %v408_v32, %v310_v30 }
  0xb9   : > { %491 = vmatprep.subr.bf16.mxu0 %v416_v34  ;;  %965 = vmatprep.subr.bf16.mxu1 %v1026_v17 }
  0xba   : > { %v303_v15 = vpop.permute.xlu0 %302 }
  0xbb   : > { %v309_v35 = vsel %vm308_vm11, %v303_v15, %v305_v22  ;;  %962 = vmatmul.mubr.msk.bf16.vlgmr.msra.gmra.mxu1 %vm464_vm12, %v1006_v18 }
  0xbc   : > { %v413_v37 = vsel %vm411_vm8, %v406_v36, %v309_v35  ;;  %975 = vmatprep.mubr.msk.bf16.mxu1 %vm1032_vm0, %v1026_v17  ;;  %vm615_vm0 = vcmask 1011520  }
  0xbd   : > { %492 = vmatpush1.bf16.msra.mxu0 %v413_v37 }
  0xc0   : > { %927 = vmatmul.mubr.msk.bf16.vlgmr.msra.gmra.mxu0 %vm464_vm12, %v1006_v18 }
  0xc1   : > { %791 = vmatprep.mubr.bf16.mxu0 %v1034_v28 }
  0xc3   : > { %v452_v9 = vpop.permute.xlu1 %451 }
 0x17b   : > { %v554_v38 = vpop.f32.mrf.mxu1 }
 0x17c   : > { %v555_v39 = vadd.f32 %v554_v38, %v452_v9 }
 0x17d   : > { %v963_v40 = vpop.f32.mrf.mxu1 }
 0x17e   : > { %v566_v41 = vmin.f32 %v555_v39, 0.0  ;;  %vm563_vm13 = vcmp.gt.f32.partialorder %v555_v39, 0.0 }
 0x17f   : > { %v1194_v44 = vpop.f32.mrf.mxu1 }
 0x180   : > { %v511_v42 = vpop.f32.mrf.mxu0  ;;  %v571_v45 = vmul.f32 1.442695, %v566_v41 }
 0x181   : > { %v512_v43 = vadd.f32 %v511_v42, %v452_v9  ;;  %v964_v49 = vpop.f32.mrf.mxu1 }
 0x182   : > { %v513_v46 = vpop.f32.mrf.mxu0  ;;  %1008 = vpow2.f32 %v571_v45 }
 0x183   : > { %v564_v47 = vmin.f32 %v512_v43, 0.0  ;;  %v514_v48 = vadd.f32 %v513_v46, %v452_v9  ;;  %vm561_vm15 = vcmp.gt.f32.partialorder %v512_v43, 0.0 }
 0x185   : > { %v567_v50 = vmul.f32 1.442695, %v564_v47  ;;  %v565_v51 = vmin.f32 %v514_v48, 0.0  ;;  %vm562_vm2 = vcmp.gt.f32.partialorder %v514_v48, 0.0 }
 0x187   : > { %1010 = vpow2.f32 %v567_v50  ;;  %v569_v52 = vmul.f32 1.442695, %v565_v51 }
 0x189   : > { %1012 = vpow2.f32 %v569_v52 }
 0x18f   : > { %v1009_v55 = vpop.eup %1008 }
 0x190   : > { %v931_v57 = vadd.f32 -1.0, %v1009_v55 }
 0x192   : > { %v578_v61 = vsel %vm563_vm13, %v555_v39, %v931_v57 }
 0x193   : > { %v598_v62 = vmul.f32 %v592_v56, %v578_v61 }
 0x194   : > { %v1011_v60 = vpop.eup %1010 }
 0x195   : > { %v929_v63 = vadd.f32 -1.0, %v1011_v60  ;;  %v944_v4 = vpack.c.bf16 %v598_v62, %v598_v62 }
 0x196   : > { %v1013_v0 = vpop.eup %1012 }
 0x197   : > { %v576_v5 = vsel %vm561_vm15, %v512_v43, %v929_v63  ;;  %v930_v6 = vadd.f32 -1.0, %v1013_v0  ;;  %614 = vst.msk [vmem:[#allocation2 + $0x8] sm:$0xf] %vm613_vm14, %v944_v4 }
 0x198   : > { %616 = vst.msk [vmem:[#allocation2 + $0x8] sm:$0xf] %vm615_vm0, %v1034_v28  ;;  %v596_v3 = vmul.f32 %v584_v1, %v576_v5  ;;  %v740_v28 = vld [vmem:[%s1322_s5] sm:$0xff] }
 0x199   : > { %v577_v7 = vsel %vm562_vm2, %v514_v48, %v930_v6  ;;  %v739_v6 = vld [vmem:[%s1321_s4] sm:$0xf] }
 0x19a   : > { %v597_v8 = vmul.f32 %v588_v2, %v577_v7  ;;  %v1205_v11 = vpack.c.bf16 %v596_v3, %v596_v3  ;;  %v515_v7 = vpop.f32.mrf.mxu0 }
 0x19c   : > { %v1203_v10 = vpack.c.bf16 %v597_v8, %v597_v8  ;;  %683 = vrot.lane.b32.xlu0 %v1205_v11, %s1025_s27  ;;  %v517_v3 = vpop.f32.mrf.mxu0 }
 0x19e   : > { %685 = vrot.lane.b32.xlu1 %v1203_v10, %s1025_s27 }
 0x19f   : > { %v1211_v12 = vld [vmem:[#allocation2 + $0x8] ss:$0 sps:$4 sm:$0xff]  }
 0x1a0   : > { %687 = vrot.lane.b32.xlu0 %v1211_v12, %s1025_s27 }
 0x1a2   : > { %669 = vrot.lane.b32.xlu1 %v1203_v10, %s1029_s30 }
 0x1a4   : > { %671 = vrot.lane.b32.xlu0 %v1211_v12, %s1029_s30 }
 0x1a6   : > { %677 = vrot.lane.b32.xlu1 %v1203_v10, %s1030_s7 }
 0x1a8   : > { %679 = vrot.lane.b32.xlu0 %v1211_v12, %s1030_s7 }
 0x1aa   : > { %667 = vrot.lane.b32.xlu1 %v1205_v11, %s1029_s30 }
 0x1ac   : > { %675 = vrot.lane.b32.xlu0 %v1205_v11, %s1030_s7 }
 0x1ae   : > { %653 = vrot.lane.b32.xlu1 %v1203_v10, %s1027_s28 }
 0x1b0   : > { %655 = vrot.lane.b32.xlu0 %v1211_v12, %s1027_s28 }
 0x1b2   : > { %661 = vrot.lane.b32.xlu1 %v1203_v10, %s1028_s29 }
 0x1b4   : > { %663 = vrot.lane.b32.xlu0 %v1211_v12, %s1028_s29 }
 0x1b6   : > { %651 = vrot.lane.b32.xlu1 %v1205_v11, %s1027_s28 }
 0x1b8   : > { %659 = vrot.lane.b32.xlu0 %v1205_v11, %s1028_s29  ;;  %s251_s29 = scalar_lea.vmem %s1323_s6, %s979_s25 }
 0x1ba   : > { %637 = vrot.lane.b32.xlu1 %v1203_v10, %s1033_s9 }
 0x1bc   : > { %639 = vrot.lane.b32.xlu0 %v1211_v12, %s1033_s9 }
 0x1be   : > { %645 = vrot.lane.b32.xlu1 %v1203_v10, %s1035_s10 }
 0x1c0   : > { %647 = vrot.lane.b32.xlu0 %v1211_v12, %s1035_s10 }
 0x1c2   : > { %635 = vrot.lane.b32.xlu1 %v1205_v11, %s1033_s9 }
 0x1c4   : > { %643 = vrot.lane.b32.xlu0 %v1205_v11, %s1035_s10 }
 0x1c6   : > { %629 = vrot.lane.b32.xlu1 %v1203_v10, %s1031_s8 }
 0x1c8   : > { %631 = vrot.lane.b32.xlu0 %v1211_v12, %s1031_s8 }
 0x1ca   : > { %627 = vrot.lane.b32.xlu1 %v1205_v11, %s1031_s8 }
 0x1cc   : > { %456 = vperm.xlu0 %1001, %v448_v13  }
 0x1ce   : > { %743 = vperm.xlu1 %1000, %v740_v28  }
 0x20e   : > { %v684_v16 = vpop.permute.xlu0 %683 }
 0x210   : > { %v686_v14 = vpop.permute.xlu1 %685 }
 0x211   : > { %v689_v19 = vsel %vm390_vm1, %v684_v16, %v686_v14 }
 0x212   : > { %v688_v21 = vpop.permute.xlu0 %687  ;;  %v751_v24 = vsel %vm404_vm7, %v689_v19, 0 }
 0x213   : > { %v690_v22 = vsel %vm390_vm1, %v686_v14, %v688_v21  ;;  %v757_v23 = vsel %vm404_vm7, %v688_v21, 0  ;;  %vm746_vm1 = vcmask 588800  }
 0x214   : > { %v670_v20 = vpop.permute.xlu1 %669  ;;  %937 = vmatprep.subr.msk.bf16.mxu0 %vm404_vm7, %v690_v22  ;;  %966 = vmatpush3.bf16.msra.mxu1 %v757_v23 }
 0x215   : > { %766 = vmatpush1.bf16.msra.mxu0 %v751_v24  ;;  %967 = vmatprep.subr.bf16.mxu1 %v1026_v17 }
 0x216   : > { %v672_v26 = vpop.permute.xlu0 %671 }
 0x217   : > { %v674_v30 = vsel %vm355_vm4, %v670_v20, %v672_v26 }
 0x218   : > { %v678_v25 = vpop.permute.xlu1 %677 }
 0x21a   : > { %v680_v29 = vpop.permute.xlu0 %679 }
 0x21b   : > { %v682_v31 = vsel %vm376_vm6, %v678_v25, %v680_v29  ;;  %v737_v32 = vsel %vm404_vm7, %v672_v26, %v680_v29 }
 0x21c   : > { %v668_v27 = vpop.permute.xlu1 %667  ;;  %968 = vmatpush3.bf16.msra.mxu1 %v737_v32  ;;  %v733_v18 = vsel %vm404_vm7, %v674_v30, %v682_v31 }
 0x21d   : > { %767 = vmatprep.subr.bf16.mxu0 %v733_v18  ;;  %969 = vmatprep.subr.bf16.mxu1 %v1026_v17  ;;  %v673_v34 = vsel %vm355_vm4, %v668_v27, %v670_v20 }
 0x21e   : > { %v676_v15 = vpop.permute.xlu0 %675 }
 0x21f   : > { %v681_v35 = vsel %vm376_vm6, %v676_v15, %v678_v25 }
 0x220   : > { %v654_v33 = vpop.permute.xlu1 %653  ;;  %v729_v36 = vsel %vm404_vm7, %v673_v34, %v681_v35 }
 0x221   : > { %768 = vmatpush1.bf16.msra.mxu0 %v729_v36 }
 0x222   : > { %v656_v9 = vpop.permute.xlu0 %655 }
 0x223   : > { %v658_v40 = vsel %vm317_vm5, %v654_v33, %v656_v9 }
 0x224   : > { %v662_v37 = vpop.permute.xlu1 %661 }
 0x226   : > { %v664_v39 = vpop.permute.xlu0 %663 }
 0x227   : > { %v666_v41 = vsel %vm326_vm3, %v662_v37, %v664_v39  ;;  %v725_v42 = vsel %vm404_vm7, %v656_v9, %v664_v39 }
 0x228   : > { %v652_v38 = vpop.permute.xlu1 %651  ;;  %970 = vmatpush3.bf16.msra.mxu1 %v725_v42  ;;  %v721_v43 = vsel %vm404_vm7, %v658_v40, %v666_v41 }
 0x229   : > { %769 = vmatprep.subr.bf16.mxu0 %v721_v43  ;;  %971 = vmatprep.subr.bf16.mxu1 %v1026_v17  ;;  %v657_v47 = vsel %vm317_vm5, %v652_v38, %v654_v33 }
 0x22a   : > { %v660_v46 = vpop.permute.xlu0 %659 }
 0x22b   : > { %v665_v48 = vsel %vm326_vm3, %v660_v46, %v662_v37  ;;  %vm860_vm3 = vcmask 523264  }
 0x22c   : > { %v638_v45 = vpop.permute.xlu1 %637  ;;  %v717_v49 = vsel %vm404_vm7, %v657_v47, %v665_v48 }
 0x22d   : > { %770 = vmatpush1.bf16.msra.mxu0 %v717_v49 }
 0x22e   : > { %v640_v51 = vpop.permute.xlu0 %639 }
 0x22f   : > { %v642_v54 = vsel %vm298_vm10, %v638_v45, %v640_v51 }
 0x230   : > { %v646_v50 = vpop.permute.xlu1 %645 }
 0x232   : > { %v648_v53 = vpop.permute.xlu0 %647 }
 0x233   : > { %v650_v55 = vsel %vm308_vm11, %v646_v50, %v648_v53  ;;  %v713_v56 = vsel %vm404_vm7, %v640_v51, %v648_v53 }
 0x234   : > { %v636_v52 = vpop.permute.xlu1 %635  ;;  %972 = vmatpush3.bf16.msra.mxu1 %v713_v56  ;;  %v709_v57 = vsel %vm404_vm7, %v642_v54, %v650_v55 }
 0x235   : > { %771 = vmatprep.subr.bf16.mxu0 %v709_v57  ;;  %973 = vmatprep.subr.bf16.mxu1 %v1026_v17  ;;  %v641_v60 = vsel %vm298_vm10, %v636_v52, %v638_v45 }
 0x236   : > { %v644_v59 = vpop.permute.xlu0 %643 }
 0x237   : > { %v649_v61 = vsel %vm308_vm11, %v644_v59, %v646_v50 }
 0x238   : > { %v630_v58 = vpop.permute.xlu1 %629  ;;  %v705_v62 = vsel %vm404_vm7, %v641_v60, %v649_v61 }
 0x239   : > { %772 = vmatpush1.bf16.msra.mxu0 %v705_v62 }
 0x23a   : > { %v632_v0 = vpop.permute.xlu0 %631 }
 0x23b   : > { %v634_v2 = vsel %vm287_vm9, %v630_v58, %v632_v0  ;;  %v701_v4 = vsel %vm404_vm7, %v1211_v12, %v632_v0 }
 0x23c   : > { %v628_v63 = vpop.permute.xlu1 %627  ;;  %974 = vmatpush3.bf16.msra.mxu1 %v701_v4  ;;  %v697_v17 = vsel %vm404_vm7, %v1203_v10, %v634_v2 }
 0x23d   : > { %v633_v1 = vsel %vm287_vm9, %v628_v63, %v630_v58  ;;  %773 = vmatprep.subr.bf16.mxu0 %v697_v17 }
 0x23e   : > { %v693_v5 = vsel %vm404_vm7, %v1205_v11, %v633_v1 }
 0x23f   : > { %774 = vmatpush1.bf16.msra.mxu0 %v693_v5  ;;  %976 = vmatmul.mubr.msk.bf16.vlgmr.msra.gmra.mxu1 %vm746_vm1, %v739_v6 }
 0x242   : > { %938 = vmatmul.mubr.msk.bf16.vlgmr.msra.gmra.mxu0 %vm746_vm1, %v739_v6 }
 0x247   : > { %v457_v8 = vpop.permute.xlu0 %456 }
 0x248   : > { %v516_v12 = vadd.f32 %v515_v7, %v457_v8  ;;  %v518_v28 = vadd.f32 %v517_v3, %v457_v8  ;;  %v558_v10 = vadd.f32 %v1194_v44, %v457_v8 }
 0x249   : > { %v744_v11 = vpop.permute.xlu1 %743 }
 0x24a   : > { %845 = vrot.lane.b32.xlu0 %v518_v28, %s1027_s28  ;;  %843 = vrot.lane.b32.xlu1 %v516_v12, %s1027_s28 }
 0x24e   : > { %847 = vrot.lane.b32.xlu1 %v558_v10, %s1027_s28 }
 0x2bc   : > { %v844_v13 = vpop.permute.xlu1 %843  ;;  %v846_v16 = vpop.permute.xlu0 %845 }
 0x2bd   : > { %v850_v44 = vsel %vm317_vm5, %v844_v13, %v846_v16 }
 0x2c0   : > { %v848_v19 = vpop.permute.xlu1 %847 }
 0x2c1   : > { %v851_v30 = vsel %vm317_vm5, %v846_v16, %v848_v19 }
 0x2ff   : > { %v834_v14 = vpop.f32.mrf.mxu1 }
 0x300   : > { %v835_v20 = vadd.f32 %v834_v14, %v744_v11 }
 0x301   : > { %v977_v22 = vpop.f32.mrf.mxu1 }
 0x302   : > { %v793_v21 = vpop.f32.mrf.mxu0  ;;  %v857_v23 = vadd.f32 %v848_v19, %v835_v20 }
 0x303   : > { %v794_v24 = vadd.f32 %v793_v21, %v744_v11  ;;  %v837_v26 = vpop.f32.mrf.mxu1 }
 0x304   : > { %v795_v25 = vpop.f32.mrf.mxu0  ;;  %861 = vst.msk [vmem:[%s251_s29 + $0x10] sm:$0xff] %vm860_vm3, %v857_v23 }
 0x305   : > { %v855_v27 = vadd.f32 %v850_v44, %v794_v24  ;;  %v796_v29 = vadd.f32 %v795_v25, %v744_v11  ;;  %v978_v32 = vpop.f32.mrf.mxu1 }
 0x306   : > { %v797_v31 = vpop.f32.mrf.mxu0 }
 0x307   : > { %858 = vst [vmem:[%s251_s29] sm:$0xff] %v855_v27  ;;  %v856_v18 = vadd.f32 %v851_v30, %v796_v29 }
 0x308   : > { %v798_v33 = vpop.f32.mrf.mxu0 }
 0x309   : > { %859 = vst [vmem:[%s251_s29 + $0x8] sm:$0xff] %v856_v18 }
 0x30a PF: > { %s16_s21 = sadd.s32 1, %s1022_s21  }
 0x30b   : > { %p13_p4 = scmp.ge.s32.totalorder %s16_s21, 4  }
 0x30d   :  { %15 = sbr.rel (!%p13_p4) target bundleno = 1 (0x1), region = 74 }

</bundles_post_ra>
